<compile_context>
chip_gen: v5e
topology: v5e:2x2
jax: 0.10.0
libtpu: 0.0.40
codegen_flags: <defaults>
</compile_context>

<pallas_src>
import functools

import jax
import jax.numpy as jnp
from jax import lax
from jax.experimental import pallas as pl
from jax.experimental.pallas import tpu as pltpu

BN_EPS = 1e-5
LANE = 128
SUBLANE = 8
VMEM_LIMIT = 48 * 1024 * 1024  # fits v7x (64 MiB phys) and v5e/v6e comfortably


def _round_up(x, m):
    return (x + m - 1) // m * m


def _pad2d(a, rows, cols):
    return jnp.pad(a, ((0, rows - a.shape[0]), (0, cols - a.shape[1])))


def _pad1d(v, c):
    return jnp.pad(v.astype(jnp.float32), (0, c - v.shape[0]))


# ------------------------- phase 1: matmul + stats ------------------------- #
def _matmul_stats_kernel(p_ref, w_ref, y_ref, stats_ref, acc_ref):
    """acc += patches @ W (bf16 x bf16 -> f32). On last K step, emit the f32
    pre-BN tile plus per-channel [sum; sum_of_squares] partials."""
    k = pl.program_id(2)

    @pl.when(k == 0)
    def _():
        acc_ref[...] = jnp.zeros_like(acc_ref)

    acc_ref[...] += jnp.dot(p_ref[...], w_ref[...],
                            preferred_element_type=jnp.float32)

    @pl.when(k == pl.num_programs(2) - 1)
    def _():
        acc = acc_ref[...]
        y_ref[...] = acc
        s = jnp.sum(acc, axis=0, keepdims=True)          # (1, TN)
        ss = jnp.sum(acc * acc, axis=0, keepdims=True)   # (1, TN)
        row = lax.broadcasted_iota(jnp.int32, stats_ref.shape, 0)
        stats_ref[...] = jnp.where(row == 0, s, jnp.where(row == 1, ss, 0.0))


def conv_matmul_with_stats(patches, w_mat, *, tm, tk, tn):
    """Tiled (Mp,Kp)@(Kp,Cp) -> f32 pre-BN output + per-channel sum/sumsq."""
    mp, kp = patches.shape
    cp = w_mat.shape[1]
    nm, nn, nk = mp // tm, cp // tn, kp // tk

    grid_spec = pltpu.PrefetchScalarGridSpec(
        num_scalar_prefetch=0,
        grid=(nm, nn, nk),
        in_specs=[
            pl.BlockSpec((tm, tk), lambda m, n, k: (m, k)),
            pl.BlockSpec((tk, tn), lambda m, n, k: (k, n)),
        ],
        out_specs=(
            pl.BlockSpec((tm, tn), lambda m, n, k: (m, n)),
            pl.BlockSpec((SUBLANE, tn), lambda m, n, k: (m, n)),
        ),
        scratch_shapes=[pltpu.VMEM((tm, tn), jnp.float32)],
    )
    y_pre, stats = pl.pallas_call(
        _matmul_stats_kernel,
        out_shape=(
            jax.ShapeDtypeStruct((mp, cp), jnp.float32),
            jax.ShapeDtypeStruct((nm * SUBLANE, cp), jnp.float32),
        ),
        grid_spec=grid_spec,
        compiler_params=pltpu.CompilerParams(
            dimension_semantics=("parallel", "parallel", "arbitrary"),
            vmem_limit_bytes=VMEM_LIMIT,
        ),
    )(patches, w_mat)

    # Tiny cross-tile reduction of the partial stats (exact batch statistics).
    stats = stats.reshape(nm, SUBLANE, cp)
    return y_pre, stats[:, 0, :].sum(0), stats[:, 1, :].sum(0)


# ---------------- phase 2: BN affine (+ residual BN) + ReLU ---------------- #
def _bn_act_kernel(*refs, apply_relu, has_residual):
    if has_residual:
        y_ref, sc_ref, sh_ref, r_ref, rsc_ref, rsh_ref, o_ref = refs
    else:
        y_ref, sc_ref, sh_ref, o_ref = refs

    out = y_ref[...] * sc_ref[...] + sh_ref[...]
    if has_residual:
        out = out + (r_ref[...].astype(jnp.float32) * rsc_ref[...] + rsh_ref[...])
    if apply_relu:
        out = jnp.maximum(out, 0.0)
    o_ref[...] = out.astype(o_ref.dtype)


def bn_act(y_pre, scale, shift, residual=None, res_scale=None, res_shift=None,
           *, apply_relu, out_dtype, tm, tn):
    mp, cp = y_pre.shape
    nm, nn = mp // tm, cp // tn

    row_spec = pl.BlockSpec((tm, tn), lambda m, n: (m, n))
    vec_spec = pl.BlockSpec((1, tn), lambda m, n: (0, n))

    inputs = [y_pre, scale.reshape(1, cp), shift.reshape(1, cp)]
    in_specs = [row_spec, vec_spec, vec_spec]
    if residual is not None:
        inputs += [residual, res_scale.reshape(1, cp), res_shift.reshape(1, cp)]
        in_specs += [row_spec, vec_spec, vec_spec]

    kern = functools.partial(_bn_act_kernel, apply_relu=apply_relu,
                             has_residual=residual is not None)
    grid_spec = pltpu.PrefetchScalarGridSpec(
        num_scalar_prefetch=0,
        grid=(nm, nn),
        in_specs=in_specs,
        out_specs=pl.BlockSpec((tm, tn), lambda m, n: (m, n)),
    )
    return pl.pallas_call(
        kern,
        out_shape=jax.ShapeDtypeStruct((mp, cp), out_dtype),
        grid_spec=grid_spec,
        compiler_params=pltpu.CompilerParams(
            dimension_semantics=("parallel", "parallel"),
            vmem_limit_bytes=VMEM_LIMIT,
        ),
    )(*inputs)


def _bn_affine(s, ss, count, gamma, beta):
    """Fold batch statistics into a per-channel affine: y*scale + shift."""
    mean = s / count
    var = ss / count - mean * mean          # biased variance (PyTorch norm)
    scale = gamma * lax.rsqrt(var + BN_EPS)
    shift = beta - mean * scale
    return scale, shift


# ------------------------------ JAX glue ---------------------------------- #
def im2col(x_nhwc, kh, kw, stride, padding):
    n, h, w, c = x_nhwc.shape
    xp = jnp.pad(x_nhwc, ((0, 0), (padding, padding), (padding, padding), (0, 0)))
    hout = (h + 2 * padding - kh) // stride + 1
    wout = (w + 2 * padding - kw) // stride + 1
    cols = []
    for i in range(kh):
        for j in range(kw):
            cols.append(
                xp[:, i:i + hout * stride:stride, j:j + wout * stride:stride, :]
            )
    patches = jnp.concatenate(cols, axis=-1)  # (N, Hout, Wout, kh*kw*C)
    return patches.reshape(n * hout * wout, kh * kw * c), hout, wout


def torch_conv_weight_to_matmul(w_oihw):
    """(Cout, Cin, KH, KW) -> (KH*KW*Cin, Cout), matching im2col ordering."""
    cout, cin, kh, kw = w_oihw.shape
    return jnp.transpose(w_oihw, (2, 3, 1, 0)).reshape(kh * kw * cin, cout)


def init_basic_block_params(key, in_channels, out_channels, stride):
    k1, k2, k3 = jax.random.split(key, 3)
    w1 = 0.1 * jax.random.normal(k1, (out_channels, in_channels, 3, 3), jnp.float32)
    w2 = 0.1 * jax.random.normal(k2, (out_channels, out_channels, 3, 3), jnp.float32)
    params = {
        "w1": torch_conv_weight_to_matmul(w1),
        "g1": jnp.ones((out_channels,), jnp.float32),
        "b1": jnp.zeros((out_channels,), jnp.float32),
        "w2": torch_conv_weight_to_matmul(w2),
        "g2": jnp.ones((out_channels,), jnp.float32),
        "b2": jnp.zeros((out_channels,), jnp.float32),
    }
    if stride != 1 or in_channels != out_channels:
        ws = 0.1 * jax.random.normal(k3, (out_channels, in_channels, 1, 1), jnp.float32)
        params.update({
            "ws": torch_conv_weight_to_matmul(ws),
            "gs": jnp.ones((out_channels,), jnp.float32),
            "bs": jnp.zeros((out_channels,), jnp.float32),
        })
    return params


def _prep_patch_operands(patches, w_mat, mp):
    """Pad K to a lane-dense multiple, pad M, cast operands to bf16."""
    k = patches.shape[1]
    kp = _round_up(k, LANE)
    tk = min(512, kp)
    kp = _round_up(kp, tk)
    p = _pad2d(patches, mp, kp).astype(jnp.bfloat16)
    w = _pad2d(w_mat, kp, w_mat.shape[1]).astype(jnp.bfloat16)
    return p, w, tk


def basic_block_forward(x_nchw, params, in_channels, out_channels, stride):
    x = jnp.transpose(x_nchw, (0, 2, 3, 1)).astype(jnp.float32)  # NHWC
    n, h, w, _ = x.shape
    hout = (h - 1) // stride + 1
    wout = (w - 1) // stride + 1
    m = n * hout * wout                      # true BN reduction count (N*H*W)

    # Lane-dense channel padding and shared tile sizes.
    cp = _round_up(out_channels, LANE)
    tn = min(256, cp)
    cp = _round_up(cp, tn)
    tm = min(512, _round_up(m, SUBLANE))
    mp = _round_up(m, tm)

    # ---- stage 1: conv3x3(stride) + BN + ReLU (two-phase) ----
    p1, _, _ = im2col(x, 3, 3, stride, 1)
    p1, w1, tk1 = _prep_patch_operands(p1, _pad2d(params["w1"],
                                                  params["w1"].shape[0], cp), mp)
    y1_pre, s1, ss1 = conv_matmul_with_stats(p1, w1, tm=tm, tk=tk1, tn=tn)
    sc1, sh1 = _bn_affine(s1, ss1, m, _pad1d(params["g1"], cp),
                          _pad1d(params["b1"], cp))
    y1 = bn_act(y1_pre, sc1, sh1, apply_relu=True,
                out_dtype=jnp.bfloat16, tm=tm, tn=tn)      # bf16 feeds next MXU
    y1_nhwc = y1[:m, :out_channels].reshape(n, hout, wout, out_channels)

    # ---- shortcut: 1x1 conv(stride) + BN (BN folded into stage-2 kernel) ----
    if stride != 1 or in_channels != out_channels:
        ps, _, _ = im2col(x, 1, 1, stride, 0)
        ps, ws, tks = _prep_patch_operands(ps, _pad2d(params["ws"],
                                                      params["ws"].shape[0], cp), mp)
        res_pre, s_s, ss_s = conv_matmul_with_stats(ps, ws, tm=tm, tk=tks, tn=tn)
        rsc, rsh = _bn_affine(s_s, ss_s, m, _pad1d(params["gs"], cp),
                              _pad1d(params["bs"], cp))
    else:
        res_pre = _pad2d(x.reshape(m, in_channels), mp, cp)
        rsc = jnp.ones((cp,), jnp.float32)
        rsh = jnp.zeros((cp,), jnp.float32)

    # ---- stage 2: conv3x3(1) + BN, + normalized shortcut, ReLU ----
    p2, _, _ = im2col(y1_nhwc, 3, 3, 1, 1)
    p2, w2, tk2 = _prep_patch_operands(p2, _pad2d(params["w2"],
                                                  params["w2"].shape[0], cp), mp)
    y2_pre, s2, ss2 = conv_matmul_with_stats(p2, w2, tm=tm, tk=tk2, tn=tn)
    sc2, sh2 = _bn_affine(s2, ss2, m, _pad1d(params["g2"], cp),
                          _pad1d(params["b2"], cp))
    out = bn_act(y2_pre, sc2, sh2, residual=res_pre, res_scale=rsc,
                 res_shift=rsh, apply_relu=True, out_dtype=jnp.float32,
                 tm=tm, tn=tn)

    out = out[:m, :out_channels].reshape(n, hout, wout, out_channels)
    return jnp.transpose(out, (0, 3, 1, 2))  # back to NCHW


# --------------------------- pure-JAX reference ---------------------------- #
# Mirrors the kernel's deliberate quantization points (bf16 matmul operands,
# f32 accumulation, bf16 stage-1 activation) so the comparison is tight.
def basic_block_reference(x_nchw, params, in_channels, out_channels, stride):
    x = jnp.transpose(x_nchw, (0, 2, 3, 1)).astype(jnp.float32)
    n, h, w, _ = x.shape

    def conv_bn(src, w_mat, gamma, beta, kh, kw, s, pad):
        p, ho, wo = im2col(src, kh, kw, s, pad)
        acc = jnp.dot(p.astype(jnp.bfloat16), w_mat.astype(jnp.bfloat16),
                      preferred_element_type=jnp.float32)
        cnt = acc.shape[0]
        mean = acc.sum(0) / cnt
        var = (acc * acc).sum(0) / cnt - mean * mean
        scale = gamma * lax.rsqrt(var + BN_EPS)
        shift = beta - mean * scale
        return acc * scale[None, :] + shift[None, :], ho, wo

    y1, h1, w1 = conv_bn(x, params["w1"], params["g1"], params["b1"], 3, 3, stride, 1)
    y1 = jnp.maximum(y1, 0.0).astype(jnp.bfloat16).reshape(n, h1, w1, out_channels)

    if stride != 1 or in_channels != out_channels:
        sc, _, _ = conv_bn(x, params["ws"], params["gs"], params["bs"], 1, 1, stride, 0)
    else:
        sc = x.reshape(n * h1 * w1, in_channels)

    y2, _, _ = conv_bn(y1, params["w2"], params["g2"], params["b2"], 3, 3, 1, 1)
    out = jnp.maximum(y2 + sc, 0.0)
    return jnp.transpose(out.reshape(n, h1, w1, out_channels), (0, 3, 1, 2))


# --------------------------------- main ------------------------------------ #
if __name__ == "__main__":
    key = jax.random.PRNGKey(0)
    kx, kp = jax.random.split(key)

    batch, in_channels, out_channels, spatial, stride = 2, 4, 8, 16, 2
    x = jax.random.normal(kx, (batch, in_channels, spatial, spatial), jnp.float32)
    params = init_basic_block_params(kp, in_channels, out_channels, stride)

    fwd = jax.jit(functools.partial(basic_block_forward,
                                    in_channels=in_channels,
                                    out_channels=out_channels,
                                    stride=stride))
    out = jax.block_until_ready(fwd(x, params))

    expected_hw = spatial // stride
    assert out.shape == (batch, out_channels, expected_hw, expected_hw), out.shape

    ref = basic_block_reference(x, params, in_channels, out_channels, stride)
    assert jnp.allclose(out, ref, rtol=1e-2, atol=1e-2), (
        float(jnp.max(jnp.abs(out - ref)))
    )

    print("KERNEL_OK")
</pallas_src>

<mosaic_0001>
module attributes {stable_mosaic.version = 11 : i64} {
  func.func @_bn_act_kernel(%arg0: i32, %arg1: i32, %arg2: memref<128x128xf32, #tpu.memory_space<vmem>>, %arg3: memref<1x128xf32, #tpu.memory_space<vmem>>, %arg4: memref<1x128xf32, #tpu.memory_space<vmem>>, %arg5: memref<128x128xbf16, #tpu.memory_space<vmem>>) attributes {dimension_semantics = [#tpu.dimension_semantics<parallel>, #tpu.dimension_semantics<parallel>], iteration_bounds = array<i64: 1, 1>, scalar_prefetch = 0 : i64, scratch_operands = 0 : i64, tpu.core_type = #tpu.core_type<tc>, window_params = [{transform_indices = @transform_0, window_bounds = array<i64: 128, 128>}, {transform_indices = @transform_1, window_bounds = array<i64: 1, 128>}, {transform_indices = @transform_2, window_bounds = array<i64: 1, 128>}, {transform_indices = @transform_3, window_bounds = array<i64: 128, 128>}]} {
    %c0 = arith.constant 0 : index
    %c0_0 = arith.constant 0 : index
    %0 = vector.load %arg2[%c0, %c0_0] : memref<128x128xf32, #tpu.memory_space<vmem>>, vector<128x128xf32>
    %c0_1 = arith.constant 0 : index
    %c0_2 = arith.constant 0 : index
    %1 = vector.load %arg3[%c0_1, %c0_2] : memref<1x128xf32, #tpu.memory_space<vmem>>, vector<1x128xf32>
    %2 = vector.broadcast %1 : vector<1x128xf32> to vector<128x128xf32>
    %3 = arith.mulf %0, %2 : vector<128x128xf32>
    %c0_3 = arith.constant 0 : index
    %c0_4 = arith.constant 0 : index
    %4 = vector.load %arg4[%c0_3, %c0_4] : memref<1x128xf32, #tpu.memory_space<vmem>>, vector<1x128xf32>
    %5 = vector.broadcast %4 : vector<1x128xf32> to vector<128x128xf32>
    %6 = arith.addf %3, %5 : vector<128x128xf32>
    %cst = arith.constant 0.000000e+00 : f32
    %7 = vector.broadcast %cst : f32 to vector<128x128xf32>
    %8 = arith.maximumf %6, %7 : vector<128x128xf32>
    %9 = arith.truncf %8 : vector<128x128xf32> to vector<128x128xbf16>
    %c0_5 = arith.constant 0 : index
    %c0_6 = arith.constant 0 : index
    %10 = vector.load %arg5[%c0_5, %c0_6] : memref<128x128xbf16, #tpu.memory_space<vmem>>, vector<128x128xbf16>
    tpu.vector_store %arg5[%c0_5, %c0_6], %9 {strides = array<i32>} : memref<128x128xbf16, #tpu.memory_space<vmem>>, vector<128x128xbf16>,
    return
  }
  func.func @transform_0(%arg0: i32, %arg1: i32) -> (i32, i32) {
    %c0_i32 = arith.constant 0 : i32
    return %arg0, %arg1 : i32, i32
  }
  func.func @transform_1(%arg0: i32, %arg1: i32) -> (i32, i32) {
    %c0_i32 = arith.constant 0 : i32
    %c0_i32_0 = arith.constant 0 : i32
    return %c0_i32, %arg1 : i32, i32
  }
  func.func @transform_2(%arg0: i32, %arg1: i32) -> (i32, i32) {
    %c0_i32 = arith.constant 0 : i32
    %c0_i32_0 = arith.constant 0 : i32
    return %c0_i32, %arg1 : i32, i32
  }
  func.func @transform_3(%arg0: i32, %arg1: i32) -> (i32, i32) {
    %c0_i32 = arith.constant 0 : i32
    return %arg0, %arg1 : i32, i32
  }
}

module attributes {stable_mosaic.version = 11 : i64} {
  func.func @_matmul_stats_kernel(%arg0: i32, %arg1: i32, %arg2: i32, %arg3: memref<128x128xbf16, #tpu.memory_space<vmem>>, %arg4: memref<128x128xbf16, #tpu.memory_space<vmem>>, %arg5: memref<128x128xf32, #tpu.memory_space<vmem>>, %arg6: memref<8x128xf32, #tpu.memory_space<vmem>>, %arg7: memref<128x128xf32, #tpu.memory_space<vmem>>) attributes {dimension_semantics = [#tpu.dimension_semantics<parallel>, #tpu.dimension_semantics<parallel>, #tpu.dimension_semantics<arbitrary>], iteration_bounds = array<i64: 1, 1, 1>, scalar_prefetch = 0 : i64, scratch_operands = 1 : i64, tpu.core_type = #tpu.core_type<tc>, window_params = [{transform_indices = @transform_0, window_bounds = array<i64: 128, 128>}, {transform_indices = @transform_1, window_bounds = array<i64: 128, 128>}, {transform_indices = @transform_2, window_bounds = array<i64: 128, 128>}, {transform_indices = @transform_3, window_bounds = array<i64: 8, 128>}]} {
    %c0_i32 = arith.constant 0 : i32
    %0 = arith.cmpi eq, %arg2, %c0_i32 : i32
    %1 = arith.extui %0 : i1 to i32
    %c0_i32_0 = arith.constant 0 : i32
    %2 = arith.cmpi ne, %1, %c0_i32_0 : i32
    scf.if %2 {
      %cst_10 = arith.constant 0.000000e+00 : f32
      %12 = vector.broadcast %cst_10 : f32 to vector<128x128xf32>
      %c0_11 = arith.constant 0 : index
      %c0_12 = arith.constant 0 : index
      %13 = vector.load %arg7[%c0_11, %c0_12] : memref<128x128xf32, #tpu.memory_space<vmem>>, vector<128x128xf32>
      tpu.vector_store %arg7[%c0_11, %c0_12], %12 {strides = array<i32>} : memref<128x128xf32, #tpu.memory_space<vmem>>, vector<128x128xf32>,
    } else {
    }
    %c0 = arith.constant 0 : index
    %c0_1 = arith.constant 0 : index
    %3 = vector.load %arg7[%c0, %c0_1] : memref<128x128xf32, #tpu.memory_space<vmem>>, vector<128x128xf32>
    %c0_2 = arith.constant 0 : index
    %c0_3 = arith.constant 0 : index
    %4 = vector.load %arg3[%c0_2, %c0_3] : memref<128x128xbf16, #tpu.memory_space<vmem>>, vector<128x128xbf16>
    %c0_4 = arith.constant 0 : index
    %c0_5 = arith.constant 0 : index
    %5 = vector.load %arg4[%c0_4, %c0_5] : memref<128x128xbf16, #tpu.memory_space<vmem>>, vector<128x128xbf16>
    %cst = arith.constant dense<0.000000e+00> : vector<128x128xf32>
    %6 = tpu.matmul %4, %5, %cst {dimension_numbers = #tpu.dot_dimension_numbers<[1], [0], [0], [1], [0, 0, 1, 1], [], []>} : vector<128x128xbf16>, vector<128x128xbf16>, vector<128x128xf32> -> vector<128x128xf32>
    %7 = arith.addf %3, %6 : vector<128x128xf32>
    %c0_6 = arith.constant 0 : index
    %c0_7 = arith.constant 0 : index
    %8 = vector.load %arg7[%c0_6, %c0_7] : memref<128x128xf32, #tpu.memory_space<vmem>>, vector<128x128xf32>
    tpu.vector_store %arg7[%c0_6, %c0_7], %7 {strides = array<i32>} : memref<128x128xf32, #tpu.memory_space<vmem>>, vector<128x128xf32>,
    %c0_i32_8 = arith.constant 0 : i32
    %9 = arith.cmpi eq, %arg2, %c0_i32_8 : i32
    %10 = arith.extui %9 : i1 to i32
    %c0_i32_9 = arith.constant 0 : i32
    %11 = arith.cmpi ne, %10, %c0_i32_9 : i32
    scf.if %11 {
      %c0_10 = arith.constant 0 : index
      %c0_11 = arith.constant 0 : index
      %12 = vector.load %arg7[%c0_10, %c0_11] : memref<128x128xf32, #tpu.memory_space<vmem>>, vector<128x128xf32>
      %c0_12 = arith.constant 0 : index
      %c0_13 = arith.constant 0 : index
      %13 = vector.load %arg5[%c0_12, %c0_13] : memref<128x128xf32, #tpu.memory_space<vmem>>, vector<128x128xf32>
      tpu.vector_store %arg5[%c0_12, %c0_13], %12 {strides = array<i32>} : memref<128x128xf32, #tpu.memory_space<vmem>>, vector<128x128xf32>,
      %cst_14 = arith.constant dense<0.000000e+00> : vector<128xf32>
      %14 = vector.multi_reduction <add>, %12, %cst_14 [0] : vector<128x128xf32> to vector<128xf32>
      %15 = vector.shape_cast %14 : vector<128xf32> to vector<1x128xf32>
      %16 = arith.mulf %12, %12 : vector<128x128xf32>
      %cst_15 = arith.constant dense<0.000000e+00> : vector<128xf32>
      %17 = vector.multi_reduction <add>, %16, %cst_15 [0] : vector<128x128xf32> to vector<128xf32>
      %18 = vector.shape_cast %17 : vector<128xf32> to vector<1x128xf32>
      %19 = tpu.iota {dimensions = array<i32: 0>} : vector<8x128xi32>
      %c0_i32_16 = arith.constant 0 : i32
      %20 = vector.broadcast %c0_i32_16 : i32 to vector<8x128xi32>
      %21 = arith.cmpi eq, %19, %20 : vector<8x128xi32>
      %c1_i32 = arith.constant 1 : i32
      %22 = vector.broadcast %c1_i32 : i32 to vector<8x128xi32>
      %23 = arith.cmpi eq, %19, %22 : vector<8x128xi32>
      %cst_17 = arith.constant 0.000000e+00 : f32
      %24 = vector.shape_cast %18 : vector<1x128xf32> to vector<1x128xf32>
      %25 = vector.broadcast %24 : vector<1x128xf32> to vector<8x128xf32>
      %26 = vector.broadcast %cst_17 : f32 to vector<8x128xf32>
      %27 = arith.select %23, %25, %26 : vector<8x128xi1>, vector<8x128xf32>
      %28 = vector.shape_cast %15 : vector<1x128xf32> to vector<1x128xf32>
      %29 = vector.broadcast %28 : vector<1x128xf32> to vector<8x128xf32>
      %30 = arith.select %21, %29, %27 : vector<8x128xi1>, vector<8x128xf32>
      %c0_18 = arith.constant 0 : index
      %c0_19 = arith.constant 0 : index
      %31 = vector.load %arg6[%c0_18, %c0_19] : memref<8x128xf32, #tpu.memory_space<vmem>>, vector<8x128xf32>
      tpu.vector_store %arg6[%c0_18, %c0_19], %30 {strides = array<i32>} : memref<8x128xf32, #tpu.memory_space<vmem>>, vector<8x128xf32>,
    } else {
    }
    return
  }
  func.func @transform_0(%arg0: i32, %arg1: i32, %arg2: i32) -> (i32, i32) {
    %c0_i32 = arith.constant 0 : i32
    return %arg0, %arg2 : i32, i32
  }
  func.func @transform_1(%arg0: i32, %arg1: i32, %arg2: i32) -> (i32, i32) {
    %c0_i32 = arith.constant 0 : i32
    return %arg2, %arg1 : i32, i32
  }
  func.func @transform_2(%arg0: i32, %arg1: i32, %arg2: i32) -> (i32, i32) {
    %c0_i32 = arith.constant 0 : i32
    return %arg0, %arg1 : i32, i32
  }
  func.func @transform_3(%arg0: i32, %arg1: i32, %arg2: i32) -> (i32, i32) {
    %c0_i32 = arith.constant 0 : i32
    return %arg0, %arg1 : i32, i32
  }
}

module attributes {stable_mosaic.version = 11 : i64} {
  func.func @_bn_act_kernel(%arg0: i32, %arg1: i32, %arg2: memref<128x128xf32, #tpu.memory_space<vmem>>, %arg3: memref<1x128xf32, #tpu.memory_space<vmem>>, %arg4: memref<1x128xf32, #tpu.memory_space<vmem>>, %arg5: memref<128x128xf32, #tpu.memory_space<vmem>>, %arg6: memref<1x128xf32, #tpu.memory_space<vmem>>, %arg7: memref<1x128xf32, #tpu.memory_space<vmem>>, %arg8: memref<128x128xf32, #tpu.memory_space<vmem>>) attributes {dimension_semantics = [#tpu.dimension_semantics<parallel>, #tpu.dimension_semantics<parallel>], iteration_bounds = array<i64: 1, 1>, scalar_prefetch = 0 : i64, scratch_operands = 0 : i64, tpu.core_type = #tpu.core_type<tc>, window_params = [{transform_indices = @transform_0, window_bounds = array<i64: 128, 128>}, {transform_indices = @transform_1, window_bounds = array<i64: 1, 128>}, {transform_indices = @transform_2, window_bounds = array<i64: 1, 128>}, {transform_indices = @transform_3, window_bounds = array<i64: 128, 128>}, {transform_indices = @transform_4, window_bounds = array<i64: 1, 128>}, {transform_indices = @transform_5, window_bounds = array<i64: 1, 128>}, {transform_indices = @transform_6, window_bounds = array<i64: 128, 128>}]} {
    %c0 = arith.constant 0 : index
    %c0_0 = arith.constant 0 : index
    %0 = vector.load %arg2[%c0, %c0_0] : memref<128x128xf32, #tpu.memory_space<vmem>>, vector<128x128xf32>
    %c0_1 = arith.constant 0 : index
    %c0_2 = arith.constant 0 : index
    %1 = vector.load %arg3[%c0_1, %c0_2] : memref<1x128xf32, #tpu.memory_space<vmem>>, vector<1x128xf32>
    %2 = vector.broadcast %1 : vector<1x128xf32> to vector<128x128xf32>
    %3 = arith.mulf %0, %2 : vector<128x128xf32>
    %c0_3 = arith.constant 0 : index
    %c0_4 = arith.constant 0 : index
    %4 = vector.load %arg4[%c0_3, %c0_4] : memref<1x128xf32, #tpu.memory_space<vmem>>, vector<1x128xf32>
    %5 = vector.broadcast %4 : vector<1x128xf32> to vector<128x128xf32>
    %6 = arith.addf %3, %5 : vector<128x128xf32>
    %c0_5 = arith.constant 0 : index
    %c0_6 = arith.constant 0 : index
    %7 = vector.load %arg5[%c0_5, %c0_6] : memref<128x128xf32, #tpu.memory_space<vmem>>, vector<128x128xf32>
    %c0_7 = arith.constant 0 : index
    %c0_8 = arith.constant 0 : index
    %8 = vector.load %arg6[%c0_7, %c0_8] : memref<1x128xf32, #tpu.memory_space<vmem>>, vector<1x128xf32>
    %9 = vector.broadcast %8 : vector<1x128xf32> to vector<128x128xf32>
    %10 = arith.mulf %7, %9 : vector<128x128xf32>
    %c0_9 = arith.constant 0 : index
    %c0_10 = arith.constant 0 : index
    %11 = vector.load %arg7[%c0_9, %c0_10] : memref<1x128xf32, #tpu.memory_space<vmem>>, vector<1x128xf32>
    %12 = vector.broadcast %11 : vector<1x128xf32> to vector<128x128xf32>
    %13 = arith.addf %10, %12 : vector<128x128xf32>
    %14 = arith.addf %6, %13 : vector<128x128xf32>
    %cst = arith.constant 0.000000e+00 : f32
    %15 = vector.broadcast %cst : f32 to vector<128x128xf32>
    %16 = arith.maximumf %14, %15 : vector<128x128xf32>
    %c0_11 = arith.constant 0 : index
    %c0_12 = arith.constant 0 : index
    %17 = vector.load %arg8[%c0_11, %c0_12] : memref<128x128xf32, #tpu.memory_space<vmem>>, vector<128x128xf32>
    tpu.vector_store %arg8[%c0_11, %c0_12], %16 {strides = array<i32>} : memref<128x128xf32, #tpu.memory_space<vmem>>, vector<128x128xf32>,
    return
  }
  func.func @transform_0(%arg0: i32, %arg1: i32) -> (i32, i32) {
    %c0_i32 = arith.constant 0 : i32
    return %arg0, %arg1 : i32, i32
  }
  func.func @transform_1(%arg0: i32, %arg1: i32) -> (i32, i32) {
    %c0_i32 = arith.constant 0 : i32
    %c0_i32_0 = arith.constant 0 : i32
    return %c0_i32, %arg1 : i32, i32
  }
  func.func @transform_2(%arg0: i32, %arg1: i32) -> (i32, i32) {
    %c0_i32 = arith.constant 0 : i32
    %c0_i32_0 = arith.constant 0 : i32
    return %c0_i32, %arg1 : i32, i32
  }
  func.func @transform_3(%arg0: i32, %arg1: i32) -> (i32, i32) {
    %c0_i32 = arith.constant 0 : i32
    return %arg0, %arg1 : i32, i32
  }
  func.func @transform_4(%arg0: i32, %arg1: i32) -> (i32, i32) {
    %c0_i32 = arith.constant 0 : i32
    %c0_i32_0 = arith.constant 0 : i32
    return %c0_i32, %arg1 : i32, i32
  }
  func.func @transform_5(%arg0: i32, %arg1: i32) -> (i32, i32) {
    %c0_i32 = arith.constant 0 : i32
    %c0_i32_0 = arith.constant 0 : i32
    return %c0_i32, %arg1 : i32, i32
  }
  func.func @transform_6(%arg0: i32, %arg1: i32) -> (i32, i32) {
    %c0_i32 = arith.constant 0 : i32
    return %arg0, %arg1 : i32, i32
  }
}

</mosaic_0001>

<bundles_post_ra>
// kernel: basic_block_forward.6
= control target key start
LH: loop header
LB: loop body
LE: loop exit
PB: predicated region body
PF: predicated region fallthrough
CT: control target
= control target key end

     0   :  { %s287_s0 = inlined_call_operand.vmem [shape: f32[128,128], index: 0, kind: input, shape index: {}]   ;;  %s288_s1 = inlined_call_operand.vmem [shape: f32[1,128], index: 1, kind: input, shape index: {}]   ;;  %s289_s2 = inlined_call_operand.vmem [shape: f32[1,128], index: 2, kind: input, shape index: {}]   ;;  %s290_s3 = inlined_call_operand.vmem [shape: bf16[128,128], index: 3, kind: output, shape index: {}]  }
   0x1   :  { %v14_v0 = vld [vmem:[%s287_s0] sm:$0xff]  ;;  %v15_v1 = vld [vmem:[%s287_s0 + $0x8] sm:$0xff]  ;;  %v16_v4 = vld [vmem:[%s287_s0 + $0x10] sm:$0xff] }
   0x2   :  { %v169_v2 = vld [vmem:[%s288_s1] ss:$0 sm:$0xff]  ;;  %v17_v5 = vld [vmem:[%s287_s0 + $0x18] sm:$0xff]  ;;  %v19_v11 = vld [vmem:[%s287_s0 + $0x28] sm:$0xff] }
   0x3   :  { %v203_v3 = vld [vmem:[%s289_s2] ss:$0 sm:$0xff]  ;;  %v34_v7 = vmul.f32 %v169_v2, %v14_v0  ;;  %v35_v8 = vmul.f32 %v169_v2, %v15_v1  ;;  %v36_v9 = vmul.f32 %v169_v2, %v16_v4  ;;  %v37_v10 = vmul.f32 %v169_v2, %v17_v5  ;;  %v20_v12 = vld [vmem:[%s287_s0 + $0x30] sm:$0xff]  ;;  %v21_v13 = vld [vmem:[%s287_s0 + $0x38] sm:$0xff] }
   0x4   :  { %v18_v6 = vld [vmem:[%s287_s0 + $0x20] sm:$0xff]  ;;  %v39_v15 = vmul.f32 %v169_v2, %v19_v11  ;;  %v40_v16 = vmul.f32 %v169_v2, %v20_v12  ;;  %v41_v17 = vmul.f32 %v169_v2, %v21_v13  ;;  %v23_v27 = vld [vmem:[%s287_s0 + $0x48] sm:$0xff]  ;;  %v24_v32 = vld [vmem:[%s287_s0 + $0x50] sm:$0xff] }
   0x5   :  { %v38_v14 = vmul.f32 %v169_v2, %v18_v6  ;;  %v54_v18 = vadd.f32 %v203_v3, %v34_v7  ;;  %v55_v19 = vadd.f32 %v203_v3, %v35_v8  ;;  %v56_v20 = vadd.f32 %v203_v3, %v36_v9  ;;  %v22_v26 = vld [vmem:[%s287_s0 + $0x40] sm:$0xff]  ;;  %v25_v33 = vld [vmem:[%s287_s0 + $0x58] sm:$0xff]  ;;  %v27_v39 = vld [vmem:[%s287_s0 + $0x68] sm:$0xff] }
   0x6   :  { %v57_v21 = vadd.f32 %v203_v3, %v37_v10  ;;  %v59_v23 = vadd.f32 %v203_v3, %v39_v15  ;;  %v60_v24 = vadd.f32 %v203_v3, %v40_v16  ;;  %v61_v25 = vadd.f32 %v203_v3, %v41_v17  ;;  %v26_v38 = vld [vmem:[%s287_s0 + $0x60] sm:$0xff]  ;;  %v28_v44 = vld [vmem:[%s287_s0 + $0x70] sm:$0xff]  ;;  %v29_v45 = vld [vmem:[%s287_s0 + $0x78] sm:$0xff] }
   0x7   :  { %v58_v22 = vadd.f32 %v203_v3, %v38_v14  ;;  %v70_v28 = vmax.f32 %v54_v18, 0.0  ;;  %v71_v29 = vmax.f32 %v55_v19, 0.0  ;;  %v72_v30 = vmax.f32 %v56_v20, 0.0 }
   0x8   :  { %v73_v31 = vmax.f32 %v57_v21, 0.0  ;;  %v75_v35 = vmax.f32 %v59_v23, 0.0  ;;  %v76_v36 = vmax.f32 %v60_v24, 0.0  ;;  %v77_v37 = vmax.f32 %v61_v25, 0.0 }
   0x9   :  { %v74_v34 = vmax.f32 %v58_v22, 0.0  ;;  %v125_v40 = vpack.c.bf16 %v71_v29, %v70_v28  ;;  %v42_v42 = vmul.f32 %v169_v2, %v22_v26  ;;  %v43_v43 = vmul.f32 %v169_v2, %v23_v27 }
   0xa   :  { %v130_v41 = vpack.c.bf16 %v73_v31, %v72_v30  ;;  %v140_v47 = vpack.c.bf16 %v77_v37, %v76_v36  ;;  %v44_v48 = vmul.f32 %v169_v2, %v24_v32  ;;  %v45_v49 = vmul.f32 %v169_v2, %v25_v33 }
   0xb   :  { %v135_v46 = vpack.c.bf16 %v75_v35, %v74_v34  ;;  %126 = vst [vmem:[%s290_s3] sm:$0xff] %v125_v40   ;;  %v62_v50 = vadd.f32 %v203_v3, %v42_v42  ;;  %v63_v51 = vadd.f32 %v203_v3, %v43_v43  ;;  %v46_v52 = vmul.f32 %v169_v2, %v26_v38 }
   0xc   :  { %v47_v53 = vmul.f32 %v169_v2, %v27_v39  ;;  %162 = vst [vmem:[%s290_s3 + $0x8] sm:$0xff] %v130_v41   ;;  %v64_v54 = vadd.f32 %v203_v3, %v44_v48  ;;  %v65_v55 = vadd.f32 %v203_v3, %v45_v49  ;;  %v48_v56 = vmul.f32 %v169_v2, %v28_v44 }
   0xd   :  { %v49_v57 = vmul.f32 %v169_v2, %v29_v45  ;;  %163 = vst [vmem:[%s290_s3 + $0x10] sm:$0xff] %v135_v46   ;;  %v78_v58 = vmax.f32 %v62_v50, 0.0  ;;  %v79_v59 = vmax.f32 %v63_v51, 0.0  ;;  %v66_v60 = vadd.f32 %v203_v3, %v46_v52 }
   0xe   :  { %v67_v61 = vadd.f32 %v203_v3, %v47_v53  ;;  %164 = vst [vmem:[%s290_s3 + $0x18] sm:$0xff] %v140_v47   ;;  %v80_v62 = vmax.f32 %v64_v54, 0.0  ;;  %v81_v63 = vmax.f32 %v65_v55, 0.0  ;;  %v68_v0 = vadd.f32 %v203_v3, %v48_v56 }
   0xf   :  { %v69_v1 = vadd.f32 %v203_v3, %v49_v57  ;;  %v145_v2 = vpack.c.bf16 %v79_v59, %v78_v58  ;;  %v82_v4 = vmax.f32 %v66_v60, 0.0 }
  0x10   :  { %v83_v5 = vmax.f32 %v67_v61, 0.0  ;;  %v150_v6 = vpack.c.bf16 %v81_v63, %v80_v62  ;;  %v84_v7 = vmax.f32 %v68_v0, 0.0 }
  0x11   :  { %v85_v8 = vmax.f32 %v69_v1, 0.0  ;;  %165 = vst [vmem:[%s290_s3 + $0x20] sm:$0xff] %v145_v2  }
  0x12   :  { %v155_v9 = vpack.c.bf16 %v83_v5, %v82_v4  ;;  %166 = vst [vmem:[%s290_s3 + $0x28] sm:$0xff] %v150_v6  }
  0x13   :  { %v160_v10 = vpack.c.bf16 %v85_v8, %v84_v7 }
  0x14   :  { %167 = vst [vmem:[%s290_s3 + $0x30] sm:$0xff] %v155_v9  }
  0x15   :  { %168 = vst [vmem:[%s290_s3 + $0x38] sm:$0xff] %v160_v10  }

// kernel: basic_block_forward.5
= control target key start
LH: loop header
LB: loop body
LE: loop exit
PB: predicated region body
PF: predicated region fallthrough
CT: control target
= control target key end

     0   :  { %s589_s1 = inlined_call_operand.vmem [shape: bf16[128,128], index: 1, kind: input, shape index: {}]   ;;  %s590_s0 = inlined_call_operand.vmem [shape: bf16[128,128], index: 0, kind: input, shape index: {}]   ;;  %s591_s2 = inlined_call_operand.vmem [shape: f32[128,128], index: 2, kind: output, shape index: {0}]   ;;  %s592_s3 = inlined_call_operand.vmem [shape: f32[8,128], index: 3, kind: output, shape index: {1}]  }
   0x1   :  { %v445_v0 = vld [vmem:[%s589_s1 + $0x38] sm:$0xff]  ;;  %v444_v1 = vld [vmem:[%s589_s1 + $0x30] sm:$0xff]  ;;  %v443_v2 = vld [vmem:[%s589_s1 + $0x28] sm:$0xff] }
   0x2   :  { %177 = vmatpush.bf16.msra.mxu0 %v445_v0  ;;  %446 = vmatpush.bf16.msra.mxu1 %v445_v0  ;;  %v442_v3 = vld [vmem:[%s589_s1 + $0x20] sm:$0xff]  ;;  %v441_v4 = vld [vmem:[%s589_s1 + $0x18] sm:$0xff]  ;;  %v440_v5 = vld [vmem:[%s589_s1 + $0x10] sm:$0xff] }
   0x3   :  { %447 = vmatpush.bf16.msra.mxu2 %v445_v0  ;;  %448 = vmatpush.bf16.msra.mxu3 %v445_v0  ;;  %v439_v6 = vld [vmem:[%s589_s1 + $0x8] sm:$0xff]  ;;  %v438_v7 = vld [vmem:[%s589_s1] sm:$0xff]  ;;  %v432_v9 = vld [vmem:[%s590_s0 + $0x10] sm:$0xff] }
   0x4   :  { %v430_v8 = vld [vmem:[%s590_s0] sm:$0xff]  ;;  %v436_v11 = vld [vmem:[%s590_s0 + $0x30] sm:$0xff]  ;;  %v431_v12 = vld [vmem:[%s590_s0 + $0x8] sm:$0xff] }
   0x5   :  { %v434_v10 = vld [vmem:[%s590_s0 + $0x20] sm:$0xff]  ;;  %v433_v13 = vld [vmem:[%s590_s0 + $0x18] sm:$0xff]  ;;  %v435_v14 = vld [vmem:[%s590_s0 + $0x28] sm:$0xff] }
   0x6   :  { %178 = vmatpush.bf16.msra.mxu0 %v444_v1  ;;  %449 = vmatpush.bf16.msra.mxu1 %v444_v1  ;;  %v437_v15 = vld [vmem:[%s590_s0 + $0x38] sm:$0xff] }
   0x7   :  { %450 = vmatpush.bf16.msra.mxu2 %v444_v1  ;;  %451 = vmatpush.bf16.msra.mxu3 %v444_v1 }
   0xa   :  { %179 = vmatpush.bf16.msra.mxu0 %v443_v2  ;;  %452 = vmatpush.bf16.msra.mxu1 %v443_v2 }
   0xb   :  { %453 = vmatpush.bf16.msra.mxu2 %v443_v2  ;;  %454 = vmatpush.bf16.msra.mxu3 %v443_v2 }
   0xe   :  { %180 = vmatpush.bf16.msra.mxu0 %v442_v3  ;;  %455 = vmatpush.bf16.msra.mxu1 %v442_v3 }
   0xf   :  { %456 = vmatpush.bf16.msra.mxu2 %v442_v3  ;;  %457 = vmatpush.bf16.msra.mxu3 %v442_v3 }
  0x12   :  { %181 = vmatpush.bf16.msra.mxu0 %v441_v4  ;;  %458 = vmatpush.bf16.msra.mxu1 %v441_v4 }
  0x13   :  { %459 = vmatpush.bf16.msra.mxu2 %v441_v4  ;;  %460 = vmatpush.bf16.msra.mxu3 %v441_v4 }
  0x16   :  { %182 = vmatpush.bf16.msra.mxu0 %v440_v5  ;;  %461 = vmatpush.bf16.msra.mxu1 %v440_v5 }
  0x17   :  { %462 = vmatpush.bf16.msra.mxu2 %v440_v5  ;;  %463 = vmatpush.bf16.msra.mxu3 %v440_v5 }
  0x1a   :  { %183 = vmatpush.bf16.msra.mxu0 %v439_v6  ;;  %464 = vmatpush.bf16.msra.mxu1 %v439_v6 }
  0x1b   :  { %465 = vmatpush.bf16.msra.mxu2 %v439_v6  ;;  %466 = vmatpush.bf16.msra.mxu3 %v439_v6 }
  0x1e   :  { %184 = vmatpush.bf16.msra.mxu0 %v438_v7  ;;  %467 = vmatpush.bf16.msra.mxu1 %v438_v7 }
  0x1f   :  { %468 = vmatpush.bf16.msra.mxu2 %v438_v7  ;;  %469 = vmatpush.bf16.msra.mxu3 %v438_v7 }
  0x21   :  { %185 = vmatmul.bf16.vlgmr.msra.gmra.mxu0 %v430_v8  ;;  %195 = vmatmul.bf16.vlgmr.msra.gmra.mxu1 %v432_v9 }
  0x22   :  { %205 = vmatmul.bf16.vlgmr.msra.gmra.mxu2 %v434_v10  ;;  %215 = vmatmul.bf16.vlgmr.msra.gmra.mxu3 %v436_v11 }
  0x31   :  { %190 = vmatmul.bf16.gmra.mxu0 %v431_v12  ;;  %200 = vmatmul.bf16.gmra.mxu1 %v433_v13 }
  0x32   :  { %210 = vmatmul.bf16.gmra.mxu2 %v435_v14  ;;  %220 = vmatmul.bf16.gmra.mxu3 %v437_v15 }
  0x9e   :  { %v186_v16 = vpop.f32.mrf.mxu0  ;;  %v196_v17 = vpop.f32.mrf.mxu1 }
  0x9f   :  { %277 = vst [vmem:[%s591_s2] sm:$0xff] %v186_v16  ;;  %v314_v27 = vmul.f32 %v186_v16, %v186_v16  ;;  %v318_v39 = vmul.f32 %v196_v17, %v196_v17 }
  0xa0   :  { %281 = vst [vmem:[%s591_s2 + $0x20] sm:$0xff] %v196_v17 }
  0xa5   :  { %v206_v18 = vpop.f32.mrf.mxu2  ;;  %v216_v19 = vpop.f32.mrf.mxu3 }
  0xa6   :  { %v188_v20 = vpop.f32.mrf.mxu0  ;;  %v198_v21 = vpop.f32.mrf.mxu1  ;;  %285 = vst [vmem:[%s591_s2 + $0x40] sm:$0xff] %v206_v18  ;;  %v322_v53 = vmul.f32 %v206_v18, %v206_v18  ;;  %v326_v1 = vmul.f32 %v216_v19, %v216_v19 }
  0xa7   :  { %278 = vst [vmem:[%s591_s2 + $0x8] sm:$0xff] %v188_v20  ;;  %v315_v26 = vmul.f32 %v188_v20, %v188_v20  ;;  %v293_v28 = vadd.f32 %v188_v20, %v186_v16  ;;  %v319_v42 = vmul.f32 %v198_v21, %v198_v21 }
  0xa8   :  { %282 = vst [vmem:[%s591_s2 + $0x28] sm:$0xff] %v198_v21 }
  0xa9   :  { %289 = vst [vmem:[%s591_s2 + $0x60] sm:$0xff] %v216_v19  ;;  %v330_v30 = vadd.f32 %v315_v26, %v314_v27 }
  0xad   :  { %v208_v22 = vpop.f32.mrf.mxu2  ;;  %v218_v23 = vpop.f32.mrf.mxu3 }
  0xae   :  { %v191_v24 = vpop.f32.mrf.mxu0  ;;  %v201_v25 = vpop.f32.mrf.mxu1  ;;  %286 = vst [vmem:[%s591_s2 + $0x48] sm:$0xff] %v208_v22  ;;  %v323_v56 = vmul.f32 %v208_v22, %v208_v22  ;;  %v327_v4 = vmul.f32 %v218_v23, %v218_v23 }
  0xaf   :  { %279 = vst [vmem:[%s591_s2 + $0x10] sm:$0xff] %v191_v24  ;;  %v316_v29 = vmul.f32 %v191_v24, %v191_v24  ;;  %v294_v31 = vadd.f32 %v293_v28, %v191_v24  ;;  %v320_v45 = vmul.f32 %v201_v25, %v201_v25 }
  0xb0   :  { %283 = vst [vmem:[%s591_s2 + $0x30] sm:$0xff] %v201_v25 }
  0xb1   :  { %290 = vst [vmem:[%s591_s2 + $0x68] sm:$0xff] %v218_v23  ;;  %v331_v36 = vadd.f32 %v330_v30, %v316_v29 }
  0xb5   :  { %v211_v32 = vpop.f32.mrf.mxu2  ;;  %v221_v33 = vpop.f32.mrf.mxu3 }
  0xb6   :  { %v193_v34 = vpop.f32.mrf.mxu0  ;;  %v203_v35 = vpop.f32.mrf.mxu1  ;;  %287 = vst [vmem:[%s591_s2 + $0x50] sm:$0xff] %v211_v32  ;;  %v324_v60 = vmul.f32 %v211_v32, %v211_v32  ;;  %v328_v8 = vmul.f32 %v221_v33, %v221_v33 }
  0xb7   :  { %280 = vst [vmem:[%s591_s2 + $0x18] sm:$0xff] %v193_v34  ;;  %v295_v37 = vadd.f32 %v294_v31, %v193_v34  ;;  %v317_v38 = vmul.f32 %v193_v34, %v193_v34  ;;  %v321_v51 = vmul.f32 %v203_v35, %v203_v35 }
  0xb8   :  { %284 = vst [vmem:[%s591_s2 + $0x38] sm:$0xff] %v203_v35 }
  0xb9   :  { %v296_v40 = vadd.f32 %v295_v37, %v196_v17  ;;  %v332_v41 = vadd.f32 %v331_v36, %v317_v38  ;;  %291 = vst [vmem:[%s591_s2 + $0x70] sm:$0xff] %v221_v33  ;;  %v351_v17 = vlaneseq }
  0xbb   :  { %v333_v43 = vadd.f32 %v332_v41, %v318_v39  ;;  %v297_v44 = vadd.f32 %v296_v40, %v198_v21 }
  0xbd   :  { %v298_v46 = vadd.f32 %v297_v44, %v201_v25  ;;  %v334_v47 = vadd.f32 %v333_v43, %v319_v42  ;;  %v213_v48 = vpop.f32.mrf.mxu2  ;;  %v223_v49 = vpop.f32.mrf.mxu3 }
  0xbe   :  { %288 = vst [vmem:[%s591_s2 + $0x58] sm:$0xff] %v213_v48  ;;  %v325_v0 = vmul.f32 %v213_v48, %v213_v48  ;;  %v329_v12 = vmul.f32 %v223_v49, %v223_v49 }
  0xbf   :  { %v299_v50 = vadd.f32 %v298_v46, %v203_v35  ;;  %v335_v52 = vadd.f32 %v334_v47, %v320_v45  ;;  %292 = vst [vmem:[%s591_s2 + $0x78] sm:$0xff] %v223_v49 }
  0xc1   :  { %v300_v54 = vadd.f32 %v299_v50, %v206_v18  ;;  %v336_v55 = vadd.f32 %v335_v52, %v321_v51 }
  0xc3   :  { %v337_v57 = vadd.f32 %v336_v55, %v322_v53  ;;  %v301_v58 = vadd.f32 %v300_v54, %v208_v22 }
  0xc5   :  { %v302_v59 = vadd.f32 %v301_v58, %v211_v32  ;;  %v338_v61 = vadd.f32 %v337_v57, %v323_v56 }
  0xc7   :  { %v339_v62 = vadd.f32 %v338_v61, %v324_v60  ;;  %v303_v63 = vadd.f32 %v302_v59, %v213_v48 }
  0xc9   :  { %v304_v2 = vadd.f32 %v303_v63, %v216_v19  ;;  %v340_v3 = vadd.f32 %v339_v62, %v325_v0  ;;  %v352_v19 = vshrl.u32 %v351_v17, 7 }
  0xcb   :  { %v341_v5 = vadd.f32 %v340_v3, %v326_v1  ;;  %v305_v6 = vadd.f32 %v304_v2, %v218_v23  ;;  %vm354_vm0 = vcmp.eq.s32.totalorder %v352_v19, 1  ;;  %vm353_vm1 = vcmp.eq.s32.totalorder %v352_v19, 0 }
  0xcd   :  { %v306_v7 = vadd.f32 %v305_v6, %v221_v33  ;;  %v342_v9 = vadd.f32 %v341_v5, %v327_v4 }
  0xcf   :  { %v343_v10 = vadd.f32 %v342_v9, %v328_v8  ;;  %v307_v11 = vadd.f32 %v306_v7, %v223_v49 }
  0xd1   :  { %v308_v13 = vrot.slane %v307_v11, 4  ;;  %v344_v14 = vadd.f32 %v343_v10, %v329_v12 }
  0xd3   :  { %v309_v15 = vadd.f32 %v308_v13, %v307_v11  ;;  %v345_v16 = vrot.slane %v344_v14, 4 }
  0xd5   :  { %v310_v18 = vrot.slane %v309_v15, 2  ;;  %v346_v20 = vadd.f32 %v345_v16, %v344_v14 }
  0xd7   :  { %v311_v21 = vadd.f32 %v310_v18, %v309_v15  ;;  %v347_v22 = vrot.slane %v346_v20, 2 }
  0xd9   :  { %v348_v24 = vadd.f32 %v347_v22, %v346_v20  ;;  %v312_v25 = vrot.slane %v311_v21, 1 }
  0xdb   :  { %v349_v26 = vrot.slane %v348_v24, 1  ;;  %v313_v27 = vadd.f32 %v312_v25, %v311_v21 }
  0xdd   :  { %v350_v23 = vadd.f32 %v349_v26, %v348_v24 }
  0xdf   :  { %v355_v28 = vsel %vm354_vm0, %v350_v23, 0.0 }
  0xe0   :  { %v356_v29 = vsel %vm353_vm1, %v313_v27, %v355_v28 }
  0xe1   :  { %357 = vst [vmem:[%s592_s3] sm:$0xff] %v356_v29 }

// kernel: basic_block_forward.9
= control target key start
LH: loop header
LB: loop body
LE: loop exit
PB: predicated region body
PF: predicated region fallthrough
CT: control target
= control target key end

     0   :  { %s454_s0 = inlined_call_operand.vmem [shape: f32[128,128], index: 0, kind: input, shape index: {}]   ;;  %s455_s1 = inlined_call_operand.vmem [shape: f32[1,128], index: 1, kind: input, shape index: {}]   ;;  %s456_s2 = inlined_call_operand.vmem [shape: f32[1,128], index: 2, kind: input, shape index: {}]   ;;  %s457_s3 = inlined_call_operand.vmem [shape: f32[128,128], index: 3, kind: input, shape index: {}]   ;;  %s458_s4 = inlined_call_operand.vmem [shape: f32[1,128], index: 4, kind: input, shape index: {}]   ;;  %s459_s5 = inlined_call_operand.vmem [shape: f32[1,128], index: 5, kind: input, shape index: {}]   ;;  %s460_s6 = inlined_call_operand.vmem [shape: f32[128,128], index: 6, kind: output, shape index: {}]  }
   0x1   :  { %v23_v0 = vld [vmem:[%s454_s0] sm:$0xff]  ;;  %v24_v7 = vld [vmem:[%s454_s0 + $0x8] sm:$0xff]  ;;  %v25_v13 = vld [vmem:[%s454_s0 + $0x10] sm:$0xff] }
   0x2   :  { %v232_v1 = vld [vmem:[%s455_s1] ss:$0 sm:$0xff]  ;;  %v80_v8 = vld [vmem:[%s457_s3 + $0x8] sm:$0xff]  ;;  %v81_v14 = vld [vmem:[%s457_s3 + $0x10] sm:$0xff] }
   0x3   :  { %v237_v2 = vld [vmem:[%s456_s2] ss:$0 sm:$0xff]  ;;  %v43_v4 = vmul.f32 %v232_v1, %v23_v0  ;;  %v44_v11 = vmul.f32 %v232_v1, %v24_v7  ;;  %v26_v15 = vld [vmem:[%s454_s0 + $0x18] sm:$0xff]  ;;  %v45_v16 = vmul.f32 %v232_v1, %v25_v13  ;;  %v28_v26 = vld [vmem:[%s454_s0 + $0x28] sm:$0xff] }
   0x4   :  { %v79_v3 = vld [vmem:[%s457_s3] sm:$0xff]  ;;  %v46_v18 = vmul.f32 %v232_v1, %v26_v15  ;;  %v82_v19 = vld [vmem:[%s457_s3 + $0x18] sm:$0xff]  ;;  %v84_v27 = vld [vmem:[%s457_s3 + $0x28] sm:$0xff]  ;;  %v48_v39 = vmul.f32 %v232_v1, %v28_v26 }
   0x5   :  { %v246_v5 = vld [vmem:[%s458_s4] ss:$0 sm:$0xff]  ;;  %v63_v9 = vadd.f32 %v237_v2, %v43_v4  ;;  %v64_v23 = vadd.f32 %v237_v2, %v44_v11  ;;  %v65_v28 = vadd.f32 %v237_v2, %v45_v16  ;;  %v29_v36 = vld [vmem:[%s454_s0 + $0x30] sm:$0xff]  ;;  %v30_v42 = vld [vmem:[%s454_s0 + $0x38] sm:$0xff] }
   0x6   :  { %v251_v6 = vld [vmem:[%s459_s5] ss:$0 sm:$0xff]  ;;  %v99_v10 = vmul.f32 %v246_v5, %v79_v3  ;;  %v100_v12 = vmul.f32 %v246_v5, %v80_v8  ;;  %v101_v17 = vmul.f32 %v246_v5, %v81_v14  ;;  %v102_v25 = vmul.f32 %v246_v5, %v82_v19  ;;  %v85_v41 = vld [vmem:[%s457_s3 + $0x30] sm:$0xff]  ;;  %v86_v47 = vld [vmem:[%s457_s3 + $0x38] sm:$0xff] }
   0x7   :  { %v27_v20 = vld [vmem:[%s454_s0 + $0x20] sm:$0xff]  ;;  %v66_v30 = vadd.f32 %v237_v2, %v46_v18  ;;  %v104_v40 = vmul.f32 %v246_v5, %v84_v27  ;;  %v68_v50 = vadd.f32 %v237_v2, %v48_v39  ;;  %v49_v52 = vmul.f32 %v232_v1, %v29_v36  ;;  %v32_v58 = vld [vmem:[%s454_s0 + $0x48] sm:$0xff]  ;;  %v33_v0 = vld [vmem:[%s454_s0 + $0x50] sm:$0xff] }
   0x8   :  { %v83_v21 = vld [vmem:[%s457_s3 + $0x20] sm:$0xff]  ;;  %v119_v22 = vadd.f32 %v251_v6, %v99_v10  ;;  %v120_v24 = vadd.f32 %v251_v6, %v100_v12  ;;  %v121_v29 = vadd.f32 %v251_v6, %v101_v17  ;;  %v47_v31 = vmul.f32 %v232_v1, %v27_v20  ;;  %v88_v63 = vld [vmem:[%s457_s3 + $0x48] sm:$0xff]  ;;  %v34_v10 = vld [vmem:[%s454_s0 + $0x58] sm:$0xff] }
   0x9   :  { %v122_v34 = vadd.f32 %v251_v6, %v102_v25  ;;  %v103_v35 = vmul.f32 %v246_v5, %v83_v21  ;;  %v31_v48 = vld [vmem:[%s454_s0 + $0x40] sm:$0xff]  ;;  %v124_v51 = vadd.f32 %v251_v6, %v104_v40  ;;  %v105_v56 = vmul.f32 %v246_v5, %v85_v41  ;;  %v90_v19 = vld [vmem:[%s457_s3 + $0x58] sm:$0xff]  ;;  %v37_v36 = vld [vmem:[%s454_s0 + $0x70] sm:$0xff] }
   0xa   :  { %v135_v32 = vadd.f32 %v119_v22, %v63_v9  ;;  %v136_v33 = vadd.f32 %v120_v24, %v64_v23  ;;  %v137_v37 = vadd.f32 %v121_v29, %v65_v28  ;;  %v67_v38 = vadd.f32 %v237_v2, %v47_v31  ;;  %v87_v53 = vld [vmem:[%s457_s3 + $0x40] sm:$0xff]  ;;  %v89_v9 = vld [vmem:[%s457_s3 + $0x50] sm:$0xff]  ;;  %v92_v31 = vld [vmem:[%s457_s3 + $0x68] sm:$0xff] }
   0xb   :  { %v138_v45 = vadd.f32 %v122_v34, %v66_v30  ;;  %v123_v46 = vadd.f32 %v251_v6, %v103_v35  ;;  %v50_v57 = vmul.f32 %v232_v1, %v30_v42  ;;  %v140_v59 = vadd.f32 %v124_v51, %v68_v50  ;;  %v35_v24 = vld [vmem:[%s454_s0 + $0x60] sm:$0xff]  ;;  %v36_v30 = vld [vmem:[%s454_s0 + $0x68] sm:$0xff]  ;;  %v94_v51 = vld [vmem:[%s457_s3 + $0x78] sm:$0xff] }
   0xc   :  { %v151_v43 = vmax.f32 %v135_v32, 0.0  ;;  %v152_v44 = vmax.f32 %v136_v33, 0.0  ;;  %v153_v49 = vmax.f32 %v137_v37, 0.0  ;;  %v69_v60 = vadd.f32 %v237_v2, %v49_v52  ;;  %v91_v25 = vld [vmem:[%s457_s3 + $0x60] sm:$0xff] }
   0xd   :  { %v154_v54 = vmax.f32 %v138_v45, 0.0  ;;  %v139_v55 = vadd.f32 %v123_v46, %v67_v38  ;;  %v106_v61 = vmul.f32 %v246_v5, %v86_v47  ;;  %v51_v62 = vmul.f32 %v232_v1, %v31_v48  ;;  %v93_v45 = vld [vmem:[%s457_s3 + $0x70] sm:$0xff]  ;;  %v38_v46 = vld [vmem:[%s454_s0 + $0x78] sm:$0xff] }
   0xe   :  { %167 = vst [vmem:[%s460_s6] sm:$0xff] %v151_v43  ;;  %v125_v4 = vadd.f32 %v251_v6, %v105_v56  ;;  %v70_v7 = vadd.f32 %v237_v2, %v50_v57  ;;  %v107_v8 = vmul.f32 %v246_v5, %v87_v53  ;;  %v156_v11 = vmax.f32 %v140_v59, 0.0 }
   0xf   :  { %168 = vst [vmem:[%s460_s6 + $0x8] sm:$0xff] %v152_v44  ;;  %v155_v3 = vmax.f32 %v139_v55, 0.0  ;;  %v126_v12 = vadd.f32 %v251_v6, %v106_v61  ;;  %v71_v13 = vadd.f32 %v237_v2, %v51_v62  ;;  %v52_v14 = vmul.f32 %v232_v1, %v32_v58 }
  0x10   :  { %169 = vst [vmem:[%s460_s6 + $0x10] sm:$0xff] %v153_v49  ;;  %v141_v15 = vadd.f32 %v125_v4, %v69_v60  ;;  %v127_v16 = vadd.f32 %v251_v6, %v107_v8  ;;  %v108_v17 = vmul.f32 %v246_v5, %v88_v63  ;;  %v53_v18 = vmul.f32 %v232_v1, %v33_v0 }
  0x11   :  { %170 = vst [vmem:[%s460_s6 + $0x18] sm:$0xff] %v154_v54  ;;  %v142_v20 = vadd.f32 %v126_v12, %v70_v7  ;;  %v72_v21 = vadd.f32 %v237_v2, %v52_v14  ;;  %v109_v22 = vmul.f32 %v246_v5, %v89_v9  ;;  %v54_v23 = vmul.f32 %v232_v1, %v34_v10 }
  0x12   :  { %171 = vst [vmem:[%s460_s6 + $0x20] sm:$0xff] %v155_v3  ;;  %v157_v26 = vmax.f32 %v141_v15, 0.0  ;;  %v143_v27 = vadd.f32 %v127_v16, %v71_v13  ;;  %v128_v28 = vadd.f32 %v251_v6, %v108_v17  ;;  %v73_v29 = vadd.f32 %v237_v2, %v53_v18 }
  0x13   :  { %172 = vst [vmem:[%s460_s6 + $0x28] sm:$0xff] %v156_v11  ;;  %v158_v32 = vmax.f32 %v142_v20, 0.0  ;;  %v129_v33 = vadd.f32 %v251_v6, %v109_v22  ;;  %v74_v34 = vadd.f32 %v237_v2, %v54_v23  ;;  %v110_v35 = vmul.f32 %v246_v5, %v90_v19 }
  0x14   :  { %173 = vst [vmem:[%s460_s6 + $0x30] sm:$0xff] %v157_v26  ;;  %v159_v37 = vmax.f32 %v143_v27, 0.0  ;;  %v144_v38 = vadd.f32 %v128_v28, %v72_v21  ;;  %v55_v39 = vmul.f32 %v232_v1, %v35_v24  ;;  %v111_v40 = vmul.f32 %v246_v5, %v91_v25 }
  0x15   :  { %174 = vst [vmem:[%s460_s6 + $0x38] sm:$0xff] %v158_v32  ;;  %v145_v41 = vadd.f32 %v129_v33, %v73_v29  ;;  %v130_v42 = vadd.f32 %v251_v6, %v110_v35  ;;  %v56_v43 = vmul.f32 %v232_v1, %v36_v30  ;;  %v112_v44 = vmul.f32 %v246_v5, %v92_v31 }
  0x16   :  { %175 = vst [vmem:[%s460_s6 + $0x40] sm:$0xff] %v159_v37  ;;  %v160_v47 = vmax.f32 %v144_v38, 0.0  ;;  %v75_v48 = vadd.f32 %v237_v2, %v55_v39  ;;  %v131_v49 = vadd.f32 %v251_v6, %v111_v40  ;;  %v57_v50 = vmul.f32 %v232_v1, %v37_v36 }
  0x17   :  { %v161_v52 = vmax.f32 %v145_v41, 0.0  ;;  %v146_v53 = vadd.f32 %v130_v42, %v74_v34  ;;  %v76_v54 = vadd.f32 %v237_v2, %v56_v43  ;;  %v132_v55 = vadd.f32 %v251_v6, %v112_v44 }
  0x18   :  { %176 = vst [vmem:[%s460_s6 + $0x48] sm:$0xff] %v160_v47  ;;  %v147_v56 = vadd.f32 %v131_v49, %v75_v48  ;;  %v77_v57 = vadd.f32 %v237_v2, %v57_v50  ;;  %v113_v58 = vmul.f32 %v246_v5, %v93_v45  ;;  %v58_v59 = vmul.f32 %v232_v1, %v38_v46 }
  0x19   :  { %177 = vst [vmem:[%s460_s6 + $0x50] sm:$0xff] %v161_v52  ;;  %v162_v60 = vmax.f32 %v146_v53, 0.0  ;;  %v148_v61 = vadd.f32 %v132_v55, %v76_v54  ;;  %v114_v62 = vmul.f32 %v246_v5, %v94_v51 }
  0x1a   :  { %v163_v63 = vmax.f32 %v147_v56, 0.0  ;;  %v133_v0 = vadd.f32 %v251_v6, %v113_v58  ;;  %v78_v3 = vadd.f32 %v237_v2, %v58_v59 }
  0x1b   :  { %178 = vst [vmem:[%s460_s6 + $0x58] sm:$0xff] %v162_v60  ;;  %v164_v4 = vmax.f32 %v148_v61, 0.0  ;;  %v134_v1 = vadd.f32 %v251_v6, %v114_v62 }
  0x1c   :  { %179 = vst [vmem:[%s460_s6 + $0x60] sm:$0xff] %v163_v63  ;;  %v149_v7 = vadd.f32 %v133_v0, %v77_v57 }
  0x1d   :  { %180 = vst [vmem:[%s460_s6 + $0x68] sm:$0xff] %v164_v4  ;;  %v150_v5 = vadd.f32 %v134_v1, %v78_v3 }
  0x1e   :  { %v165_v8 = vmax.f32 %v149_v7, 0.0 }
  0x1f   :  { %v166_v9 = vmax.f32 %v150_v5, 0.0 }
  0x20   :  { %181 = vst [vmem:[%s460_s6 + $0x70] sm:$0xff] %v165_v8 }
  0x21   :  { %182 = vst [vmem:[%s460_s6 + $0x78] sm:$0xff] %v166_v9 }

</bundles_post_ra>
